<compile_context>
chip_gen: v5e
topology: v5e:2x2
jax: 0.10.0
libtpu: 0.0.40
codegen_flags: <defaults>
</compile_context>

<pallas_src>
import functools
import math

import jax
import jax.numpy as jnp
from jax.experimental import pallas as pl
from jax.experimental.pallas import tpu as pltpu


_VMEM_BUDGET = 12 * 1024 * 1024  # double-buffered blocks + f32 accumulator


def _round_up(v: int, m: int) -> int:
    return ((v + m - 1) // m) * m


def _pick_tile(D: int, align: int, cap: int) -> int:
    """Largest tile <= cap (multiple of `align`) with small padding waste."""
    Dr = _round_up(D, align)
    if Dr <= cap:
        return Dr
    cands = [c for c in (cap, cap // 2, cap // 4, cap // 8) if c >= align]
    for t in cands:  # largest first; accept <= ~12.5% padding waste
        if _round_up(Dr, t) - Dr <= max(Dr // 8, align):
            return t
    return min(cands, key=lambda t: _round_up(Dr, t))


def _pick_tiles(M: int, N: int, K: int, bx: int, by: int, bo: int):
    """Tile sizes for one (per-batch) matmul, bounded by the VMEM budget."""
    tm = _pick_tile(M, 8, 512)
    tn = _pick_tile(N, 128, 512)
    tk = _pick_tile(K, 128, 2048)

    def fp(tm, tn, tk):
        return (2 * tm * tk * bx + 2 * tk * tn * by
                + 2 * tm * tn * bo + tm * tn * 4)

    while fp(tm, tn, tk) > _VMEM_BUDGET:
        if tk > 512:
            tk = max(512, _round_up(tk // 2, 128))
        elif tn > 128:
            tn = max(128, _round_up(tn // 2, 128))
        elif tm > 128:
            tm = max(128, _round_up(tm // 2, 8))
        else:
            break
    return tm, tn, tk


def _pick_bb(B, tm, tn, tk, bx, by, bo, x_batched, y_batched):
    """Batches per grid step (divides B, fits VMEM, unroll capped at 8)."""
    def fp(bb):
        return (2 * (bb if x_batched else 1) * tm * tk * bx
                + 2 * (bb if y_batched else 1) * tk * tn * by
                + 2 * bb * tm * tn * bo
                + bb * tm * tn * 4)

    for cand in range(min(B, 8), 0, -1):
        if B % cand == 0 and fp(cand) <= _VMEM_BUDGET:
            return cand
    return 1


# --------------------------------------------------------------------------
# 2-D kernel (also used for the batch-folded-into-M case).
# --------------------------------------------------------------------------
def _mm_kernel(x_ref, y_ref, o_ref, acc_ref):
    k = pl.program_id(2)

    @pl.when(k == 0)
    def _():
        acc_ref[...] = jnp.zeros_like(acc_ref)

    acc_ref[...] += jnp.dot(
        x_ref[...], y_ref[...], preferred_element_type=jnp.float32
    )

    @pl.when(k == pl.num_programs(2) - 1)
    def _():
        o_ref[...] = acc_ref[...].astype(o_ref.dtype)


@functools.partial(jax.jit, static_argnames=("tm", "tn", "tk"))
def _mm_pallas(x2, y2, *, tm, tn, tk):
    Mp, Kp = x2.shape
    _, Np = y2.shape
    out_dtype = jnp.result_type(x2.dtype, y2.dtype)

    grid = (Mp // tm, Np // tn, Kp // tk)
    cost = pl.CostEstimate(
        flops=2 * Mp * Np * Kp,
        transcendentals=0,
        bytes_accessed=(x2.size * x2.dtype.itemsize
                        + y2.size * y2.dtype.itemsize
                        + Mp * Np * jnp.dtype(out_dtype).itemsize),
    )

    return pl.pallas_call(
        _mm_kernel,
        out_shape=jax.ShapeDtypeStruct((Mp, Np), out_dtype),
        grid_spec=pltpu.PrefetchScalarGridSpec(
            num_scalar_prefetch=0,
            grid=grid,
            in_specs=[
                pl.BlockSpec((tm, tk), lambda i, j, k: (i, k)),
                pl.BlockSpec((tk, tn), lambda i, j, k: (k, j)),
            ],
            out_specs=pl.BlockSpec((tm, tn), lambda i, j, k: (i, j)),
            scratch_shapes=[pltpu.VMEM((tm, tn), jnp.float32)],
        ),
        compiler_params=pltpu.CompilerParams(
            dimension_semantics=("parallel", "parallel", "arbitrary"),
        ),
        cost_estimate=cost,
    )(x2, y2)


# --------------------------------------------------------------------------
# Batched kernel (RHS batched; LHS batched or shared), with batch blocking.
# --------------------------------------------------------------------------
def _bmm_kernel(x_ref, y_ref, o_ref, acc_ref, *, x_batched, y_batched):
    k = pl.program_id(3)

    @pl.when(k == 0)
    def _():
        acc_ref[...] = jnp.zeros_like(acc_ref)

    for b in range(o_ref.shape[0]):  # static unroll over the batch block
        acc_ref[b] += jnp.dot(
            x_ref[b if x_batched else 0],
            y_ref[b if y_batched else 0],
            preferred_element_type=jnp.float32,
        )

    @pl.when(k == pl.num_programs(3) - 1)
    def _():
        o_ref[...] = acc_ref[...].astype(o_ref.dtype)


@functools.partial(
    jax.jit, static_argnames=("tm", "tn", "tk", "bb", "x_batched", "y_batched")
)
def _bmm_pallas(x3, y3, *, tm, tn, tk, bb, x_batched, y_batched):
    Bx, Mp, Kp = x3.shape
    By, _, Np = y3.shape
    B = max(Bx, By)
    out_dtype = jnp.result_type(x3.dtype, y3.dtype)

    bx_blk = bb if x_batched else 1
    by_blk = bb if y_batched else 1

    def x_map(b, i, j, k):
        return (b if x_batched else 0, i, k)

    def y_map(b, i, j, k):
        return (b if y_batched else 0, k, j)

    def o_map(b, i, j, k):
        return (b, i, j)

    grid = (B // bb, Mp // tm, Np // tn, Kp // tk)

    cost = pl.CostEstimate(
        flops=2 * B * Mp * Np * Kp,
        transcendentals=0,
        bytes_accessed=(x3.size * x3.dtype.itemsize
                        + y3.size * y3.dtype.itemsize
                        + B * Mp * Np * jnp.dtype(out_dtype).itemsize),
    )

    kernel = functools.partial(
        _bmm_kernel, x_batched=x_batched, y_batched=y_batched
    )

    return pl.pallas_call(
        kernel,
        out_shape=jax.ShapeDtypeStruct((B, Mp, Np), out_dtype),
        grid_spec=pltpu.PrefetchScalarGridSpec(
            num_scalar_prefetch=0,
            grid=grid,
            in_specs=[
                pl.BlockSpec((bx_blk, tm, tk), x_map),
                pl.BlockSpec((by_blk, tk, tn), y_map),
            ],
            out_specs=pl.BlockSpec((bb, tm, tn), o_map),
            scratch_shapes=[pltpu.VMEM((bb, tm, tn), jnp.float32)],
        ),
        compiler_params=pltpu.CompilerParams(
            dimension_semantics=("parallel", "parallel", "parallel", "arbitrary"),
        ),
        cost_estimate=cost,
    )(x3, y3)


# --------------------------------------------------------------------------
# torch.matmul-style wrapper.
# --------------------------------------------------------------------------
def _to_batched_3d(a, batch_shape, mk_shape):
    """Reshape `a` to (Ba, *mk_shape) with Ba in {1, B}, avoiding broadcast
    materialization when possible."""
    B = math.prod(batch_shape) if batch_shape else 1
    ab = tuple(a.shape[:-2])
    Ba = math.prod(ab) if ab else 1
    if Ba == 1:
        return a.reshape((1,) + mk_shape)
    if ab == tuple(batch_shape):
        return a.reshape((B,) + mk_shape)
    # Rare mixed broadcast (e.g. (2,1,M,K) vs (1,3,K,N)): materialize.
    return jnp.broadcast_to(a, tuple(batch_shape) + mk_shape).reshape(
        (B,) + mk_shape
    )


def matmul_functional(x, y):
    """JAX/Pallas equivalent of torch.matmul(x, y) for >=2-D inputs."""
    if x.ndim < 2 or y.ndim < 2:
        raise NotImplementedError("Only >=2-D inputs are supported.")

    M, K = x.shape[-2], x.shape[-1]
    K2, N = y.shape[-2], y.shape[-1]
    assert K == K2, f"Inner dims must match: {K} vs {K2}"

    batch_shape = jnp.broadcast_shapes(x.shape[:-2], y.shape[:-2])
    B = math.prod(batch_shape) if batch_shape else 1

    x3 = _to_batched_3d(x, batch_shape, (M, K))
    y3 = _to_batched_3d(y, batch_shape, (K, N))

    bx = x3.dtype.itemsize
    by = y3.dtype.itemsize
    bo = jnp.dtype(jnp.result_type(x3.dtype, y3.dtype)).itemsize

    if y3.shape[0] == 1:
        # Shared RHS (plain 2-D matmul or batched-x @ weight): fold batch
        # into M and run the 2-D kernel -> no batch grid axis, weight read
        # from HBM exactly once.
        Mt = B * M
        x2 = x3.reshape(Mt, K)
        y2 = y3[0]
        tm, tn, tk = _pick_tiles(Mt, N, K, bx, by, bo)
        Mp, Np, Kp = _round_up(Mt, tm), _round_up(N, tn), _round_up(K, tk)
        if (Mp, Kp) != (Mt, K):
            x2 = jnp.pad(x2, ((0, Mp - Mt), (0, Kp - K)))
        if (Kp, Np) != (K, N):
            y2 = jnp.pad(y2, ((0, Kp - K), (0, Np - N)))
        out2 = _mm_pallas(x2, y2, tm=tm, tn=tn, tk=tk)
        return out2[:Mt, :N].reshape(tuple(batch_shape) + (M, N))

    # Batched RHS; LHS may be shared or batched.
    x_batched = x3.shape[0] == B and B > 1
    y_batched = True
    tm, tn, tk = _pick_tiles(M, N, K, bx, by, bo)
    bb = _pick_bb(B, tm, tn, tk, bx, by, bo, x_batched, y_batched)
    Mp, Np, Kp = _round_up(M, tm), _round_up(N, tn), _round_up(K, tk)
    if (Mp, Kp) != (M, K):
        x3 = jnp.pad(x3, ((0, 0), (0, Mp - M), (0, Kp - K)))
    if (Kp, Np) != (K, N):
        y3 = jnp.pad(y3, ((0, 0), (0, Kp - K), (0, Np - N)))

    out3 = _bmm_pallas(
        x3, y3, tm=tm, tn=tn, tk=tk, bb=bb,
        x_batched=x_batched, y_batched=y_batched,
    )
    out3 = out3[:, :M, :N]
    return out3.reshape(tuple(batch_shape) + (M, N))


def _rel_err(out, ref):
    return float(
        jnp.linalg.norm((out - ref).astype(jnp.float32))
        / (jnp.linalg.norm(ref.astype(jnp.float32)) + 1e-12)
    )


if __name__ == "__main__":
    key = jax.random.PRNGKey(0)
    ks = jax.random.split(key, 10)

    # 1) Batched 4-D (attention-like): both operands batched -> batch-blocked.
    x = jax.random.normal(ks[0], (2, 4, 16, 32), dtype=jnp.float32)
    y = jax.random.normal(ks[1], (2, 4, 32, 16), dtype=jnp.float32)
    out = matmul_functional(x, y)
    jax.block_until_ready(out)
    ref = jnp.matmul(x, y)
    assert out.shape == ref.shape == (2, 4, 16, 16)
    assert _rel_err(out, ref) < 2e-2, _rel_err(out, ref)

    # 2) Plain 2-D: [16, 32] @ [32, 8]
    a = jax.random.normal(ks[2], (16, 32), dtype=jnp.float32)
    b = jax.random.normal(ks[3], (32, 8), dtype=jnp.float32)
    out2 = matmul_functional(a, b)
    jax.block_until_ready(out2)
    ref2 = jnp.matmul(a, b)
    assert out2.shape == (16, 8)
    assert _rel_err(out2, ref2) < 2e-2, _rel_err(out2, ref2)

    # 3) Batched x @ shared 2-D weight -> batch folded into M (single pass).
    xb = jax.random.normal(ks[4], (2, 64, 1024), dtype=jnp.float32)
    w = jax.random.normal(ks[5], (1024, 256), dtype=jnp.float32)
    out3 = matmul_functional(xb, w)
    jax.block_until_ready(out3)
    ref3 = jnp.matmul(xb, w)
    assert out3.shape == (2, 64, 256)
    assert _rel_err(out3, ref3) < 2e-2, _rel_err(out3, ref3)

    # 4) Shared 2-D x @ batched y (broadcast LHS, no materialization).
    xs = jax.random.normal(ks[6], (16, 32), dtype=jnp.float32)
    yb = jax.random.normal(ks[7], (3, 32, 16), dtype=jnp.float32)
    out4 = matmul_functional(xs, yb)
    jax.block_until_ready(out4)
    ref4 = jnp.matmul(xs, yb)
    assert out4.shape == (3, 16, 16)
    assert _rel_err(out4, ref4) < 2e-2, _rel_err(out4, ref4)

    # 5) bf16, large K -> exercises the K-grid accumulation in the fold path.
    xk = jax.random.normal(ks[8], (2, 64, 4096), dtype=jnp.bfloat16)
    wk = jax.random.normal(ks[9], (4096, 256), dtype=jnp.bfloat16)
    out5 = matmul_functional(xk, wk)
    jax.block_until_ready(out5)
    ref5 = jnp.matmul(xk, wk)
    assert out5.shape == (2, 64, 256)
    assert _rel_err(out5, ref5) < 2e-2, _rel_err(out5, ref5)

    print("KERNEL_OK")
</pallas_src>

<mosaic_0001>
module attributes {stable_mosaic.version = 11 : i64} {
  func.func @_bmm_kernel(%arg0: i32, %arg1: i32, %arg2: i32, %arg3: i32, %arg4: memref<8x16x128xf32, #tpu.memory_space<vmem>>, %arg5: memref<8x128x128xf32, #tpu.memory_space<vmem>>, %arg6: memref<8x16x128xf32, #tpu.memory_space<vmem>>, %arg7: memref<8x16x128xf32, #tpu.memory_space<vmem>>) attributes {dimension_semantics = [#tpu.dimension_semantics<parallel>, #tpu.dimension_semantics<parallel>, #tpu.dimension_semantics<parallel>, #tpu.dimension_semantics<arbitrary>], iteration_bounds = array<i64: 1, 1, 1, 1>, scalar_prefetch = 0 : i64, scratch_operands = 1 : i64, tpu.core_type = #tpu.core_type<tc>, window_params = [{transform_indices = @transform_0, window_bounds = array<i64: 8, 16, 128>}, {transform_indices = @transform_1, window_bounds = array<i64: 8, 128, 128>}, {transform_indices = @transform_2, window_bounds = array<i64: 8, 16, 128>}]} {
    %c0_i32 = arith.constant 0 : i32
    %0 = arith.cmpi eq, %arg3, %c0_i32 : i32
    %1 = arith.extui %0 : i1 to i32
    %c0_i32_0 = arith.constant 0 : i32
    %2 = arith.cmpi ne, %1, %c0_i32_0 : i32
    scf.if %2 {
      %cst_98 = arith.constant 0.000000e+00 : f32
      %94 = vector.broadcast %cst_98 : f32 to vector<8x16x128xf32>
      %c0_99 = arith.constant 0 : index
      %c0_100 = arith.constant 0 : index
      %c0_101 = arith.constant 0 : index
      %95 = vector.load %arg7[%c0_99, %c0_100, %c0_101] : memref<8x16x128xf32, #tpu.memory_space<vmem>>, vector<8x16x128xf32>
      tpu.vector_store %arg7[%c0_99, %c0_100, %c0_101], %94 {strides = array<i32>} : memref<8x16x128xf32, #tpu.memory_space<vmem>>, vector<8x16x128xf32>,
    } else {
    }
    %c0 = arith.constant 0 : index
    %c0_1 = arith.constant 0 : index
    %c0_2 = arith.constant 0 : index
    %3 = vector.load %arg7[%c0, %c0_1, %c0_2] : memref<8x16x128xf32, #tpu.memory_space<vmem>>, vector<1x16x128xf32>
    %4 = vector.shape_cast %3 : vector<1x16x128xf32> to vector<16x128xf32>
    %c0_3 = arith.constant 0 : index
    %c0_4 = arith.constant 0 : index
    %c0_5 = arith.constant 0 : index
    %5 = vector.load %arg4[%c0_3, %c0_4, %c0_5] : memref<8x16x128xf32, #tpu.memory_space<vmem>>, vector<1x16x128xf32>
    %6 = vector.shape_cast %5 : vector<1x16x128xf32> to vector<16x128xf32>
    %c0_6 = arith.constant 0 : index
    %c0_7 = arith.constant 0 : index
    %c0_8 = arith.constant 0 : index
    %7 = vector.load %arg5[%c0_6, %c0_7, %c0_8] : memref<8x128x128xf32, #tpu.memory_space<vmem>>, vector<1x128x128xf32>
    %8 = vector.shape_cast %7 : vector<1x128x128xf32> to vector<128x128xf32>
    %cst = arith.constant dense<0.000000e+00> : vector<16x128xf32>
    %9 = tpu.matmul %6, %8, %cst {dimension_numbers = #tpu.dot_dimension_numbers<[1], [0], [0], [1], [0, 0, 1, 1], [], []>} : vector<16x128xf32>, vector<128x128xf32>, vector<16x128xf32> -> vector<16x128xf32>
    %10 = arith.addf %4, %9 : vector<16x128xf32>
    %c0_9 = arith.constant 0 : index
    %c0_10 = arith.constant 0 : index
    %c0_11 = arith.constant 0 : index
    %11 = vector.load %arg7[%c0_9, %c0_10, %c0_11] : memref<8x16x128xf32, #tpu.memory_space<vmem>>, vector<1x16x128xf32>
    %12 = vector.shape_cast %11 : vector<1x16x128xf32> to vector<16x128xf32>
    %13 = vector.shape_cast %10 : vector<16x128xf32> to vector<1x16x128xf32>
    tpu.vector_store %arg7[%c0_9, %c0_10, %c0_11], %13 {strides = array<i32>} : memref<8x16x128xf32, #tpu.memory_space<vmem>>, vector<1x16x128xf32>,
    %c1 = arith.constant 1 : index
    %c0_12 = arith.constant 0 : index
    %c0_13 = arith.constant 0 : index
    %14 = vector.load %arg7[%c1, %c0_12, %c0_13] : memref<8x16x128xf32, #tpu.memory_space<vmem>>, vector<1x16x128xf32>
    %15 = vector.shape_cast %14 : vector<1x16x128xf32> to vector<16x128xf32>
    %c1_14 = arith.constant 1 : index
    %c0_15 = arith.constant 0 : index
    %c0_16 = arith.constant 0 : index
    %16 = vector.load %arg4[%c1_14, %c0_15, %c0_16] : memref<8x16x128xf32, #tpu.memory_space<vmem>>, vector<1x16x128xf32>
    %17 = vector.shape_cast %16 : vector<1x16x128xf32> to vector<16x128xf32>
    %c1_17 = arith.constant 1 : index
    %c0_18 = arith.constant 0 : index
    %c0_19 = arith.constant 0 : index
    %18 = vector.load %arg5[%c1_17, %c0_18, %c0_19] : memref<8x128x128xf32, #tpu.memory_space<vmem>>, vector<1x128x128xf32>
    %19 = vector.shape_cast %18 : vector<1x128x128xf32> to vector<128x128xf32>
    %cst_20 = arith.constant dense<0.000000e+00> : vector<16x128xf32>
    %20 = tpu.matmul %17, %19, %cst_20 {dimension_numbers = #tpu.dot_dimension_numbers<[1], [0], [0], [1], [0, 0, 1, 1], [], []>} : vector<16x128xf32>, vector<128x128xf32>, vector<16x128xf32> -> vector<16x128xf32>
    %21 = arith.addf %15, %20 : vector<16x128xf32>
    %c1_21 = arith.constant 1 : index
    %c0_22 = arith.constant 0 : index
    %c0_23 = arith.constant 0 : index
    %22 = vector.load %arg7[%c1_21, %c0_22, %c0_23] : memref<8x16x128xf32, #tpu.memory_space<vmem>>, vector<1x16x128xf32>
    %23 = vector.shape_cast %22 : vector<1x16x128xf32> to vector<16x128xf32>
    %24 = vector.shape_cast %21 : vector<16x128xf32> to vector<1x16x128xf32>
    tpu.vector_store %arg7[%c1_21, %c0_22, %c0_23], %24 {strides = array<i32>} : memref<8x16x128xf32, #tpu.memory_space<vmem>>, vector<1x16x128xf32>,
    %c2 = arith.constant 2 : index
    %c0_24 = arith.constant 0 : index
    %c0_25 = arith.constant 0 : index
    %25 = vector.load %arg7[%c2, %c0_24, %c0_25] : memref<8x16x128xf32, #tpu.memory_space<vmem>>, vector<1x16x128xf32>
    %26 = vector.shape_cast %25 : vector<1x16x128xf32> to vector<16x128xf32>
    %c2_26 = arith.constant 2 : index
    %c0_27 = arith.constant 0 : index
    %c0_28 = arith.constant 0 : index
    %27 = vector.load %arg4[%c2_26, %c0_27, %c0_28] : memref<8x16x128xf32, #tpu.memory_space<vmem>>, vector<1x16x128xf32>
    %28 = vector.shape_cast %27 : vector<1x16x128xf32> to vector<16x128xf32>
    %c2_29 = arith.constant 2 : index
    %c0_30 = arith.constant 0 : index
    %c0_31 = arith.constant 0 : index
    %29 = vector.load %arg5[%c2_29, %c0_30, %c0_31] : memref<8x128x128xf32, #tpu.memory_space<vmem>>, vector<1x128x128xf32>
    %30 = vector.shape_cast %29 : vector<1x128x128xf32> to vector<128x128xf32>
    %cst_32 = arith.constant dense<0.000000e+00> : vector<16x128xf32>
    %31 = tpu.matmul %28, %30, %cst_32 {dimension_numbers = #tpu.dot_dimension_numbers<[1], [0], [0], [1], [0, 0, 1, 1], [], []>} : vector<16x128xf32>, vector<128x128xf32>, vector<16x128xf32> -> vector<16x128xf32>
    %32 = arith.addf %26, %31 : vector<16x128xf32>
    %c2_33 = arith.constant 2 : index
    %c0_34 = arith.constant 0 : index
    %c0_35 = arith.constant 0 : index
    %33 = vector.load %arg7[%c2_33, %c0_34, %c0_35] : memref<8x16x128xf32, #tpu.memory_space<vmem>>, vector<1x16x128xf32>
    %34 = vector.shape_cast %33 : vector<1x16x128xf32> to vector<16x128xf32>
    %35 = vector.shape_cast %32 : vector<16x128xf32> to vector<1x16x128xf32>
    tpu.vector_store %arg7[%c2_33, %c0_34, %c0_35], %35 {strides = array<i32>} : memref<8x16x128xf32, #tpu.memory_space<vmem>>, vector<1x16x128xf32>,
    %c3 = arith.constant 3 : index
    %c0_36 = arith.constant 0 : index
    %c0_37 = arith.constant 0 : index
    %36 = vector.load %arg7[%c3, %c0_36, %c0_37] : memref<8x16x128xf32, #tpu.memory_space<vmem>>, vector<1x16x128xf32>
    %37 = vector.shape_cast %36 : vector<1x16x128xf32> to vector<16x128xf32>
    %c3_38 = arith.constant 3 : index
    %c0_39 = arith.constant 0 : index
    %c0_40 = arith.constant 0 : index
    %38 = vector.load %arg4[%c3_38, %c0_39, %c0_40] : memref<8x16x128xf32, #tpu.memory_space<vmem>>, vector<1x16x128xf32>
    %39 = vector.shape_cast %38 : vector<1x16x128xf32> to vector<16x128xf32>
    %c3_41 = arith.constant 3 : index
    %c0_42 = arith.constant 0 : index
    %c0_43 = arith.constant 0 : index
    %40 = vector.load %arg5[%c3_41, %c0_42, %c0_43] : memref<8x128x128xf32, #tpu.memory_space<vmem>>, vector<1x128x128xf32>
    %41 = vector.shape_cast %40 : vector<1x128x128xf32> to vector<128x128xf32>
    %cst_44 = arith.constant dense<0.000000e+00> : vector<16x128xf32>
    %42 = tpu.matmul %39, %41, %cst_44 {dimension_numbers = #tpu.dot_dimension_numbers<[1], [0], [0], [1], [0, 0, 1, 1], [], []>} : vector<16x128xf32>, vector<128x128xf32>, vector<16x128xf32> -> vector<16x128xf32>
    %43 = arith.addf %37, %42 : vector<16x128xf32>
    %c3_45 = arith.constant 3 : index
    %c0_46 = arith.constant 0 : index
    %c0_47 = arith.constant 0 : index
    %44 = vector.load %arg7[%c3_45, %c0_46, %c0_47] : memref<8x16x128xf32, #tpu.memory_space<vmem>>, vector<1x16x128xf32>
    %45 = vector.shape_cast %44 : vector<1x16x128xf32> to vector<16x128xf32>
    %46 = vector.shape_cast %43 : vector<16x128xf32> to vector<1x16x128xf32>
    tpu.vector_store %arg7[%c3_45, %c0_46, %c0_47], %46 {strides = array<i32>} : memref<8x16x128xf32, #tpu.memory_space<vmem>>, vector<1x16x128xf32>,
    %c4 = arith.constant 4 : index
    %c0_48 = arith.constant 0 : index
    %c0_49 = arith.constant 0 : index
    %47 = vector.load %arg7[%c4, %c0_48, %c0_49] : memref<8x16x128xf32, #tpu.memory_space<vmem>>, vector<1x16x128xf32>
    %48 = vector.shape_cast %47 : vector<1x16x128xf32> to vector<16x128xf32>
    %c4_50 = arith.constant 4 : index
    %c0_51 = arith.constant 0 : index
    %c0_52 = arith.constant 0 : index
    %49 = vector.load %arg4[%c4_50, %c0_51, %c0_52] : memref<8x16x128xf32, #tpu.memory_space<vmem>>, vector<1x16x128xf32>
    %50 = vector.shape_cast %49 : vector<1x16x128xf32> to vector<16x128xf32>
    %c4_53 = arith.constant 4 : index
    %c0_54 = arith.constant 0 : index
    %c0_55 = arith.constant 0 : index
    %51 = vector.load %arg5[%c4_53, %c0_54, %c0_55] : memref<8x128x128xf32, #tpu.memory_space<vmem>>, vector<1x128x128xf32>
    %52 = vector.shape_cast %51 : vector<1x128x128xf32> to vector<128x128xf32>
    %cst_56 = arith.constant dense<0.000000e+00> : vector<16x128xf32>
    %53 = tpu.matmul %50, %52, %cst_56 {dimension_numbers = #tpu.dot_dimension_numbers<[1], [0], [0], [1], [0, 0, 1, 1], [], []>} : vector<16x128xf32>, vector<128x128xf32>, vector<16x128xf32> -> vector<16x128xf32>
    %54 = arith.addf %48, %53 : vector<16x128xf32>
    %c4_57 = arith.constant 4 : index
    %c0_58 = arith.constant 0 : index
    %c0_59 = arith.constant 0 : index
    %55 = vector.load %arg7[%c4_57, %c0_58, %c0_59] : memref<8x16x128xf32, #tpu.memory_space<vmem>>, vector<1x16x128xf32>
    %56 = vector.shape_cast %55 : vector<1x16x128xf32> to vector<16x128xf32>
    %57 = vector.shape_cast %54 : vector<16x128xf32> to vector<1x16x128xf32>
    tpu.vector_store %arg7[%c4_57, %c0_58, %c0_59], %57 {strides = array<i32>} : memref<8x16x128xf32, #tpu.memory_space<vmem>>, vector<1x16x128xf32>,
    %c5 = arith.constant 5 : index
    %c0_60 = arith.constant 0 : index
    %c0_61 = arith.constant 0 : index
    %58 = vector.load %arg7[%c5, %c0_60, %c0_61] : memref<8x16x128xf32, #tpu.memory_space<vmem>>, vector<1x16x128xf32>
    %59 = vector.shape_cast %58 : vector<1x16x128xf32> to vector<16x128xf32>
    %c5_62 = arith.constant 5 : index
    %c0_63 = arith.constant 0 : index
    %c0_64 = arith.constant 0 : index
    %60 = vector.load %arg4[%c5_62, %c0_63, %c0_64] : memref<8x16x128xf32, #tpu.memory_space<vmem>>, vector<1x16x128xf32>
    %61 = vector.shape_cast %60 : vector<1x16x128xf32> to vector<16x128xf32>
    %c5_65 = arith.constant 5 : index
    %c0_66 = arith.constant 0 : index
    %c0_67 = arith.constant 0 : index
    %62 = vector.load %arg5[%c5_65, %c0_66, %c0_67] : memref<8x128x128xf32, #tpu.memory_space<vmem>>, vector<1x128x128xf32>
    %63 = vector.shape_cast %62 : vector<1x128x128xf32> to vector<128x128xf32>
    %cst_68 = arith.constant dense<0.000000e+00> : vector<16x128xf32>
    %64 = tpu.matmul %61, %63, %cst_68 {dimension_numbers = #tpu.dot_dimension_numbers<[1], [0], [0], [1], [0, 0, 1, 1], [], []>} : vector<16x128xf32>, vector<128x128xf32>, vector<16x128xf32> -> vector<16x128xf32>
    %65 = arith.addf %59, %64 : vector<16x128xf32>
    %c5_69 = arith.constant 5 : index
    %c0_70 = arith.constant 0 : index
    %c0_71 = arith.constant 0 : index
    %66 = vector.load %arg7[%c5_69, %c0_70, %c0_71] : memref<8x16x128xf32, #tpu.memory_space<vmem>>, vector<1x16x128xf32>
    %67 = vector.shape_cast %66 : vector<1x16x128xf32> to vector<16x128xf32>
    %68 = vector.shape_cast %65 : vector<16x128xf32> to vector<1x16x128xf32>
    tpu.vector_store %arg7[%c5_69, %c0_70, %c0_71], %68 {strides = array<i32>} : memref<8x16x128xf32, #tpu.memory_space<vmem>>, vector<1x16x128xf32>,
    %c6 = arith.constant 6 : index
    %c0_72 = arith.constant 0 : index
    %c0_73 = arith.constant 0 : index
    %69 = vector.load %arg7[%c6, %c0_72, %c0_73] : memref<8x16x128xf32, #tpu.memory_space<vmem>>, vector<1x16x128xf32>
    %70 = vector.shape_cast %69 : vector<1x16x128xf32> to vector<16x128xf32>
    %c6_74 = arith.constant 6 : index
    %c0_75 = arith.constant 0 : index
    %c0_76 = arith.constant 0 : index
    %71 = vector.load %arg4[%c6_74, %c0_75, %c0_76] : memref<8x16x128xf32, #tpu.memory_space<vmem>>, vector<1x16x128xf32>
    %72 = vector.shape_cast %71 : vector<1x16x128xf32> to vector<16x128xf32>
    %c6_77 = arith.constant 6 : index
    %c0_78 = arith.constant 0 : index
    %c0_79 = arith.constant 0 : index
    %73 = vector.load %arg5[%c6_77, %c0_78, %c0_79] : memref<8x128x128xf32, #tpu.memory_space<vmem>>, vector<1x128x128xf32>
    %74 = vector.shape_cast %73 : vector<1x128x128xf32> to vector<128x128xf32>
    %cst_80 = arith.constant dense<0.000000e+00> : vector<16x128xf32>
    %75 = tpu.matmul %72, %74, %cst_80 {dimension_numbers = #tpu.dot_dimension_numbers<[1], [0], [0], [1], [0, 0, 1, 1], [], []>} : vector<16x128xf32>, vector<128x128xf32>, vector<16x128xf32> -> vector<16x128xf32>
    %76 = arith.addf %70, %75 : vector<16x128xf32>
    %c6_81 = arith.constant 6 : index
    %c0_82 = arith.constant 0 : index
    %c0_83 = arith.constant 0 : index
    %77 = vector.load %arg7[%c6_81, %c0_82, %c0_83] : memref<8x16x128xf32, #tpu.memory_space<vmem>>, vector<1x16x128xf32>
    %78 = vector.shape_cast %77 : vector<1x16x128xf32> to vector<16x128xf32>
    %79 = vector.shape_cast %76 : vector<16x128xf32> to vector<1x16x128xf32>
    tpu.vector_store %arg7[%c6_81, %c0_82, %c0_83], %79 {strides = array<i32>} : memref<8x16x128xf32, #tpu.memory_space<vmem>>, vector<1x16x128xf32>,
    %c7 = arith.constant 7 : index
    %c0_84 = arith.constant 0 : index
    %c0_85 = arith.constant 0 : index
    %80 = vector.load %arg7[%c7, %c0_84, %c0_85] : memref<8x16x128xf32, #tpu.memory_space<vmem>>, vector<1x16x128xf32>
    %81 = vector.shape_cast %80 : vector<1x16x128xf32> to vector<16x128xf32>
    %c7_86 = arith.constant 7 : index
    %c0_87 = arith.constant 0 : index
    %c0_88 = arith.constant 0 : index
    %82 = vector.load %arg4[%c7_86, %c0_87, %c0_88] : memref<8x16x128xf32, #tpu.memory_space<vmem>>, vector<1x16x128xf32>
    %83 = vector.shape_cast %82 : vector<1x16x128xf32> to vector<16x128xf32>
    %c7_89 = arith.constant 7 : index
    %c0_90 = arith.constant 0 : index
    %c0_91 = arith.constant 0 : index
    %84 = vector.load %arg5[%c7_89, %c0_90, %c0_91] : memref<8x128x128xf32, #tpu.memory_space<vmem>>, vector<1x128x128xf32>
    %85 = vector.shape_cast %84 : vector<1x128x128xf32> to vector<128x128xf32>
    %cst_92 = arith.constant dense<0.000000e+00> : vector<16x128xf32>
    %86 = tpu.matmul %83, %85, %cst_92 {dimension_numbers = #tpu.dot_dimension_numbers<[1], [0], [0], [1], [0, 0, 1, 1], [], []>} : vector<16x128xf32>, vector<128x128xf32>, vector<16x128xf32> -> vector<16x128xf32>
    %87 = arith.addf %81, %86 : vector<16x128xf32>
    %c7_93 = arith.constant 7 : index
    %c0_94 = arith.constant 0 : index
    %c0_95 = arith.constant 0 : index
    %88 = vector.load %arg7[%c7_93, %c0_94, %c0_95] : memref<8x16x128xf32, #tpu.memory_space<vmem>>, vector<1x16x128xf32>
    %89 = vector.shape_cast %88 : vector<1x16x128xf32> to vector<16x128xf32>
    %90 = vector.shape_cast %87 : vector<16x128xf32> to vector<1x16x128xf32>
    tpu.vector_store %arg7[%c7_93, %c0_94, %c0_95], %90 {strides = array<i32>} : memref<8x16x128xf32, #tpu.memory_space<vmem>>, vector<1x16x128xf32>,
    %c0_i32_96 = arith.constant 0 : i32
    %91 = arith.cmpi eq, %arg3, %c0_i32_96 : i32
    %92 = arith.extui %91 : i1 to i32
    %c0_i32_97 = arith.constant 0 : i32
    %93 = arith.cmpi ne, %92, %c0_i32_97 : i32
    scf.if %93 {
      %c0_98 = arith.constant 0 : index
      %c0_99 = arith.constant 0 : index
      %c0_100 = arith.constant 0 : index
      %94 = vector.load %arg7[%c0_98, %c0_99, %c0_100] : memref<8x16x128xf32, #tpu.memory_space<vmem>>, vector<8x16x128xf32>
      %c0_101 = arith.constant 0 : index
      %c0_102 = arith.constant 0 : index
      %c0_103 = arith.constant 0 : index
      %95 = vector.load %arg6[%c0_101, %c0_102, %c0_103] : memref<8x16x128xf32, #tpu.memory_space<vmem>>, vector<8x16x128xf32>
      tpu.vector_store %arg6[%c0_101, %c0_102, %c0_103], %94 {strides = array<i32>} : memref<8x16x128xf32, #tpu.memory_space<vmem>>, vector<8x16x128xf32>,
    } else {
    }
    return
  }
  func.func @transform_0(%arg0: i32, %arg1: i32, %arg2: i32, %arg3: i32) -> (i32, i32, i32) {
    %c0_i32 = arith.constant 0 : i32
    return %arg0, %arg1, %arg3 : i32, i32, i32
  }
  func.func @transform_1(%arg0: i32, %arg1: i32, %arg2: i32, %arg3: i32) -> (i32, i32, i32) {
    %c0_i32 = arith.constant 0 : i32
    return %arg0, %arg3, %arg2 : i32, i32, i32
  }
  func.func @transform_2(%arg0: i32, %arg1: i32, %arg2: i32, %arg3: i32) -> (i32, i32, i32) {
    %c0_i32 = arith.constant 0 : i32
    return %arg0, %arg1, %arg2 : i32, i32, i32
  }
}

</mosaic_0001>

<bundles_post_ra>
// kernel: _bmm_pallas.1
= control target key start
LH: loop header
LB: loop body
LE: loop exit
PB: predicated region body
PF: predicated region fallthrough
CT: control target
= control target key end

     0   :  { %7 = vsyncpa [#allocation4], 0  ;;  %s637_s0 = inlined_call_operand.hbm [shape: f32[8,16,128], index: 0, kind: input, shape index: {}]   ;;  %s638_s1 = inlined_call_operand.hbm [shape: f32[8,128,128], index: 1, kind: input, shape index: {}]   ;;  %s639_s2 = inlined_call_operand.hbm [shape: f32[8,16,128], index: 2, kind: output, shape index: {}]  }
   0x1   :  { %8 = vsyncpa [#allocation7], 0 }
   0x2   :  { %9 = vsyncpa [#allocation5], 0  ;;  %s14_s11 = sshll.u32 %s637_s0, 4  ;;  %s599_s12 = smov [#allocation3]   ;;  %s15_s11 = int_to_ptr.hbm [resolvable:$true] %s14_s11 }
   0x3   :  { %s16_s13 = sshll.u32 %s599_s12, 4  ;;  %s27_s16 = sshll.u32 %s638_s1, 4  ;;  %s17_s13 = int_to_ptr.vmem [resolvable:$true] %s16_s13  ;;  %s28_s16 = int_to_ptr.hbm [resolvable:$true] %s27_s16 }
   0x4   :  { %s600_s17 = smov 128   ;;  %s601_s18 = smov 8  }
   0x5   :  { %22 = dma.hbm_to_vmem [thread:$0]  %s15_s11, 2048, %s17_s13, [#allocation4], %s600_s17, %s600_s17, %s601_s18  }
   0x6   :  { %s602_s19 = smov [#allocation6]  }
   0x7   :  { %s29_s20 = sshll.u32 %s602_s19, 4  ;;  %s30_s20 = int_to_ptr.vmem [resolvable:$true] %s29_s20 }
   0x8   :  { %35 = dma.hbm_to_vmem [thread:$0]  %s28_s16, 16384, %s30_s20, [#allocation7], %s600_s17, %s600_s17, %s601_s18  }
   0x9   :  { %593 = dma.done.wait [#allocation4], 2048  }
   0xa   :  { %594 = vsyncadd [#allocation4], 4294965248 }
   0xb   :  { %595 = dma.done.wait [#allocation7], 16384  }
   0xc   :  { %596 = vsyncadd [#allocation7], 4294950912  ;;  %v183_v0 = vld [vmem:[#allocation6 + $0x178] sm:$0xff]  ;;  %v182_v2 = vld [vmem:[#allocation6 + $0x170] sm:$0xff]  ;;  %s603_s0 = smov [#allocation8]   ;;  %s502_s23 = sshll.u32 %s639_s2, 4  ;;  %s503_s23 = int_to_ptr.hbm [resolvable:$true] %s502_s23 }
   0xd   :  { %v233_v1 = vld [vmem:[#allocation6 + $0x1f8] sm:$0xff]  ;;  %184 = vmatpush.msra.mxu2 %v183_v0  ;;  %v232_v3 = vld [vmem:[#allocation6 + $0x1f0] sm:$0xff]  ;;  %v181_v4 = vld [vmem:[#allocation6 + $0x168] sm:$0xff]  ;;  %s500_s1 = sshll.u32 %s603_s0, 4  ;;  %s501_s1 = int_to_ptr.vmem [resolvable:$true] %s500_s1 }
   0xe   :  { %234 = vmatpush.msra.mxu3 %v233_v1  ;;  %v231_v5 = vld [vmem:[#allocation6 + $0x1e8] sm:$0xff]  ;;  %v83_v6 = vld [vmem:[#allocation6 + $0x78] sm:$0xff]  ;;  %v82_v8 = vld [vmem:[#allocation6 + $0x70] sm:$0xff] }
   0xf   :  { %v133_v7 = vld [vmem:[#allocation6 + $0xf8] sm:$0xff]  ;;  %185 = vmatpush.msra.mxu2 %v182_v2  ;;  %v132_v9 = vld [vmem:[#allocation6 + $0xf0] sm:$0xff]  ;;  %84 = vmatpush.msra.mxu0 %v83_v6  ;;  %v180_v10 = vld [vmem:[#allocation6 + $0x160] sm:$0xff] }
  0x10   :  { %235 = vmatpush.msra.mxu3 %v232_v3  ;;  %134 = vmatpush.msra.mxu1 %v133_v7  ;;  %v230_v11 = vld [vmem:[#allocation6 + $0x1e0] sm:$0xff]  ;;  %v81_v12 = vld [vmem:[#allocation6 + $0x68] sm:$0xff]  ;;  %v179_v14 = vld [vmem:[#allocation6 + $0x158] sm:$0xff] }
  0x11   :  { %186 = vmatpush.msra.mxu2 %v181_v4  ;;  %v131_v13 = vld [vmem:[#allocation6 + $0xe8] sm:$0xff]  ;;  %85 = vmatpush.msra.mxu0 %v82_v8  ;;  %v229_v15 = vld [vmem:[#allocation6 + $0x1d8] sm:$0xff]  ;;  %v80_v16 = vld [vmem:[#allocation6 + $0x60] sm:$0xff] }
  0x12   :  { %236 = vmatpush.msra.mxu3 %v231_v5  ;;  %135 = vmatpush.msra.mxu1 %v132_v9  ;;  %v130_v17 = vld [vmem:[#allocation6 + $0xe0] sm:$0xff]  ;;  %v178_v18 = vld [vmem:[#allocation6 + $0x150] sm:$0xff]  ;;  %v79_v20 = vld [vmem:[#allocation6 + $0x58] sm:$0xff] }
  0x13   :  { %187 = vmatpush.msra.mxu2 %v180_v10  ;;  %86 = vmatpush.msra.mxu0 %v81_v12  ;;  %v228_v19 = vld [vmem:[#allocation6 + $0x1d0] sm:$0xff]  ;;  %v129_v21 = vld [vmem:[#allocation6 + $0xd8] sm:$0xff]  ;;  %v177_v22 = vld [vmem:[#allocation6 + $0x148] sm:$0xff] }
  0x14   :  { %237 = vmatpush.msra.mxu3 %v230_v11  ;;  %136 = vmatpush.msra.mxu1 %v131_v13  ;;  %v227_v23 = vld [vmem:[#allocation6 + $0x1c8] sm:$0xff]  ;;  %v78_v24 = vld [vmem:[#allocation6 + $0x50] sm:$0xff]  ;;  %v176_v26 = vld [vmem:[#allocation6 + $0x140] sm:$0xff] }
  0x15   :  { %188 = vmatpush.msra.mxu2 %v179_v14  ;;  %87 = vmatpush.msra.mxu0 %v80_v16  ;;  %v128_v25 = vld [vmem:[#allocation6 + $0xd0] sm:$0xff]  ;;  %v226_v27 = vld [vmem:[#allocation6 + $0x1c0] sm:$0xff]  ;;  %v77_v28 = vld [vmem:[#allocation6 + $0x48] sm:$0xff] }
  0x16   :  { %238 = vmatpush.msra.mxu3 %v229_v15  ;;  %137 = vmatpush.msra.mxu1 %v130_v17  ;;  %v127_v29 = vld [vmem:[#allocation6 + $0xc8] sm:$0xff]  ;;  %v175_v30 = vld [vmem:[#allocation6 + $0x138] sm:$0xff]  ;;  %v76_v32 = vld [vmem:[#allocation6 + $0x40] sm:$0xff] }
  0x17   :  { %189 = vmatpush.msra.mxu2 %v178_v18  ;;  %88 = vmatpush.msra.mxu0 %v79_v20  ;;  %v225_v31 = vld [vmem:[#allocation6 + $0x1b8] sm:$0xff]  ;;  %v126_v33 = vld [vmem:[#allocation6 + $0xc0] sm:$0xff]  ;;  %v174_v34 = vld [vmem:[#allocation6 + $0x130] sm:$0xff] }
  0x18   :  { %239 = vmatpush.msra.mxu3 %v228_v19  ;;  %138 = vmatpush.msra.mxu1 %v129_v21  ;;  %v224_v35 = vld [vmem:[#allocation6 + $0x1b0] sm:$0xff]  ;;  %v75_v36 = vld [vmem:[#allocation6 + $0x38] sm:$0xff]  ;;  %v173_v38 = vld [vmem:[#allocation6 + $0x128] sm:$0xff] }
  0x19   :  { %190 = vmatpush.msra.mxu2 %v177_v22  ;;  %89 = vmatpush.msra.mxu0 %v78_v24  ;;  %v125_v37 = vld [vmem:[#allocation6 + $0xb8] sm:$0xff]  ;;  %v223_v39 = vld [vmem:[#allocation6 + $0x1a8] sm:$0xff]  ;;  %v74_v40 = vld [vmem:[#allocation6 + $0x30] sm:$0xff] }
  0x1a   :  { %240 = vmatpush.msra.mxu3 %v227_v23  ;;  %139 = vmatpush.msra.mxu1 %v128_v25  ;;  %v124_v41 = vld [vmem:[#allocation6 + $0xb0] sm:$0xff]  ;;  %v172_v42 = vld [vmem:[#allocation6 + $0x120] sm:$0xff]  ;;  %v73_v44 = vld [vmem:[#allocation6 + $0x28] sm:$0xff] }
  0x1b   :  { %191 = vmatpush.msra.mxu2 %v176_v26  ;;  %90 = vmatpush.msra.mxu0 %v77_v28  ;;  %v222_v43 = vld [vmem:[#allocation6 + $0x1a0] sm:$0xff]  ;;  %v123_v45 = vld [vmem:[#allocation6 + $0xa8] sm:$0xff]  ;;  %v171_v46 = vld [vmem:[#allocation6 + $0x118] sm:$0xff] }
  0x1c   :  { %241 = vmatpush.msra.mxu3 %v226_v27  ;;  %140 = vmatpush.msra.mxu1 %v127_v29  ;;  %v221_v47 = vld [vmem:[#allocation6 + $0x198] sm:$0xff]  ;;  %v72_v48 = vld [vmem:[#allocation6 + $0x20] sm:$0xff]  ;;  %v170_v50 = vld [vmem:[#allocation6 + $0x110] sm:$0xff] }
  0x1d   :  { %192 = vmatpush.msra.mxu2 %v175_v30  ;;  %91 = vmatpush.msra.mxu0 %v76_v32  ;;  %v122_v49 = vld [vmem:[#allocation6 + $0xa0] sm:$0xff]  ;;  %v220_v51 = vld [vmem:[#allocation6 + $0x190] sm:$0xff]  ;;  %v71_v52 = vld [vmem:[#allocation6 + $0x18] sm:$0xff] }
  0x1e   :  { %242 = vmatpush.msra.mxu3 %v225_v31  ;;  %141 = vmatpush.msra.mxu1 %v126_v33  ;;  %v121_v53 = vld [vmem:[#allocation6 + $0x98] sm:$0xff]  ;;  %v169_v54 = vld [vmem:[#allocation6 + $0x108] sm:$0xff]  ;;  %v70_v56 = vld [vmem:[#allocation6 + $0x10] sm:$0xff] }
  0x1f   :  { %193 = vmatpush.msra.mxu2 %v174_v34  ;;  %92 = vmatpush.msra.mxu0 %v75_v36  ;;  %v219_v55 = vld [vmem:[#allocation6 + $0x188] sm:$0xff]  ;;  %v120_v57 = vld [vmem:[#allocation6 + $0x90] sm:$0xff]  ;;  %v168_v58 = vld [vmem:[#allocation6 + $0x100] sm:$0xff] }
  0x20   :  { %243 = vmatpush.msra.mxu3 %v224_v35  ;;  %142 = vmatpush.msra.mxu1 %v125_v37  ;;  %v218_v59 = vld [vmem:[#allocation6 + $0x180] sm:$0xff]  ;;  %v383_v60 = vld [vmem:[#allocation6 + $0x378] sm:$0xff]  ;;  %v69_v62 = vld [vmem:[#allocation6 + $0x8] sm:$0xff] }
  0x21   :  { %194 = vmatpush.msra.mxu2 %v173_v38  ;;  %93 = vmatpush.msra.mxu0 %v74_v40  ;;  %v433_v61 = vld [vmem:[#allocation6 + $0x3f8] sm:$0xff]  ;;  %v119_v63 = vld [vmem:[#allocation6 + $0x88] sm:$0xff]  ;;  %v382_v0 = vld [vmem:[#allocation6 + $0x370] sm:$0xff] }
  0x22   :  { %244 = vmatpush.msra.mxu3 %v223_v39  ;;  %143 = vmatpush.msra.mxu1 %v124_v41  ;;  %v432_v1 = vld [vmem:[#allocation6 + $0x3f0] sm:$0xff]  ;;  %v68_v2 = vld [vmem:[#allocation6] sm:$0xff]  ;;  %v381_v4 = vld [vmem:[#allocation6 + $0x368] sm:$0xff] }
  0x23   :  { %195 = vmatpush.msra.mxu2 %v172_v42  ;;  %94 = vmatpush.msra.mxu0 %v73_v44  ;;  %v118_v3 = vld [vmem:[#allocation6 + $0x80] sm:$0xff]  ;;  %v431_v5 = vld [vmem:[#allocation6 + $0x3e8] sm:$0xff]  ;;  %v283_v6 = vld [vmem:[#allocation6 + $0x278] sm:$0xff] }
  0x24   :  { %245 = vmatpush.msra.mxu3 %v222_v43  ;;  %144 = vmatpush.msra.mxu1 %v123_v45  ;;  %v333_v7 = vld [vmem:[#allocation6 + $0x2f8] sm:$0xff]  ;;  %v380_v8 = vld [vmem:[#allocation6 + $0x360] sm:$0xff]  ;;  %v282_v10 = vld [vmem:[#allocation6 + $0x270] sm:$0xff] }
  0x25   :  { %196 = vmatpush.msra.mxu2 %v171_v46  ;;  %95 = vmatpush.msra.mxu0 %v72_v48  ;;  %v430_v9 = vld [vmem:[#allocation6 + $0x3e0] sm:$0xff]  ;;  %v332_v11 = vld [vmem:[#allocation6 + $0x2f0] sm:$0xff]  ;;  %v379_v12 = vld [vmem:[#allocation6 + $0x358] sm:$0xff] }
  0x26   :  { %246 = vmatpush.msra.mxu3 %v221_v47  ;;  %145 = vmatpush.msra.mxu1 %v122_v49  ;;  %v429_v13 = vld [vmem:[#allocation6 + $0x3d8] sm:$0xff]  ;;  %v281_v14 = vld [vmem:[#allocation6 + $0x268] sm:$0xff]  ;;  %v378_v16 = vld [vmem:[#allocation6 + $0x350] sm:$0xff] }
  0x27   :  { %197 = vmatpush.msra.mxu2 %v170_v50  ;;  %96 = vmatpush.msra.mxu0 %v71_v52  ;;  %v331_v15 = vld [vmem:[#allocation6 + $0x2e8] sm:$0xff]  ;;  %v428_v17 = vld [vmem:[#allocation6 + $0x3d0] sm:$0xff]  ;;  %v280_v18 = vld [vmem:[#allocation6 + $0x260] sm:$0xff] }
  0x28   :  { %247 = vmatpush.msra.mxu3 %v220_v51  ;;  %146 = vmatpush.msra.mxu1 %v121_v53  ;;  %v330_v19 = vld [vmem:[#allocation6 + $0x2e0] sm:$0xff]  ;;  %v377_v20 = vld [vmem:[#allocation6 + $0x348] sm:$0xff]  ;;  %v279_v22 = vld [vmem:[#allocation6 + $0x258] sm:$0xff] }
  0x29   :  { %198 = vmatpush.msra.mxu2 %v169_v54  ;;  %97 = vmatpush.msra.mxu0 %v70_v56  ;;  %v427_v21 = vld [vmem:[#allocation6 + $0x3c8] sm:$0xff]  ;;  %v329_v23 = vld [vmem:[#allocation6 + $0x2d8] sm:$0xff]  ;;  %v376_v24 = vld [vmem:[#allocation6 + $0x340] sm:$0xff] }
  0x2a   :  { %248 = vmatpush.msra.mxu3 %v219_v55  ;;  %147 = vmatpush.msra.mxu1 %v120_v57  ;;  %v426_v25 = vld [vmem:[#allocation6 + $0x3c0] sm:$0xff]  ;;  %v215_v27 = vld [vmem:[#allocation3 + $0x30] sm:$0xff]  ;;  %v375_v30 = vld [vmem:[#allocation6 + $0x338] sm:$0xff] }
  0x2b   :  { %199 = vmatpush.msra.mxu2 %v168_v58  ;;  %98 = vmatpush.msra.mxu0 %v69_v62  ;;  %v165_v26 = vld [vmem:[#allocation3 + $0x20] sm:$0xff]  ;;  %v278_v28 = vld [vmem:[#allocation6 + $0x250] sm:$0xff]  ;;  %v425_v31 = vld [vmem:[#allocation6 + $0x3b8] sm:$0xff] }
  0x2c   :  { %249 = vmatpush.msra.mxu3 %v218_v59  ;;  %148 = vmatpush.msra.mxu1 %v119_v63  ;;  %v328_v29 = vld [vmem:[#allocation6 + $0x2d0] sm:$0xff]  ;;  %v277_v32 = vld [vmem:[#allocation6 + $0x248] sm:$0xff]  ;;  %v276_v36 = vld [vmem:[#allocation6 + $0x240] sm:$0xff] }
  0x2d   :  { %384 = vmatpush.msrb.mxu2 %v383_v60  ;;  %99 = vmatpush.msra.mxu0 %v68_v2  ;;  %v327_v33 = vld [vmem:[#allocation6 + $0x2c8] sm:$0xff]  ;;  %v374_v34 = vld [vmem:[#allocation6 + $0x330] sm:$0xff]  ;;  %v326_v37 = vld [vmem:[#allocation6 + $0x2c0] sm:$0xff] }
  0x2e   :  { %434 = vmatpush.msrb.mxu3 %v433_v61  ;;  %149 = vmatpush.msra.mxu1 %v118_v3  ;;  %v424_v35 = vld [vmem:[#allocation6 + $0x3b0] sm:$0xff]  ;;  %v373_v38 = vld [vmem:[#allocation6 + $0x328] sm:$0xff]  ;;  %v66_v40 = vld [vmem:[#allocation3] sm:$0xff] }
  0x2f   :  { %385 = vmatpush.msrb.mxu2 %v382_v0  ;;  %284 = vmatpush.msrb.mxu0 %v283_v6  ;;  %v423_v39 = vld [vmem:[#allocation6 + $0x3a8] sm:$0xff]  ;;  %v115_v41 = vld [vmem:[#allocation3 + $0x10] sm:$0xff]  ;;  %v275_v42 = vld [vmem:[#allocation6 + $0x238] sm:$0xff] }
  0x30   :  { %435 = vmatpush.msrb.mxu3 %v432_v1  ;;  %334 = vmatpush.msrb.mxu1 %v333_v7  ;;  %v325_v43 = vld [vmem:[#allocation6 + $0x2b8] sm:$0xff]  ;;  %v372_v44 = vld [vmem:[#allocation6 + $0x320] sm:$0xff]  ;;  %v166_v46 = vld [vmem:[#allocation3 + $0x28] sm:$0xff] }
  0x31   :  { %386 = vmatpush.msrb.mxu2 %v381_v4  ;;  %285 = vmatpush.msrb.mxu0 %v282_v10  ;;  %v422_v45 = vld [vmem:[#allocation6 + $0x3a0] sm:$0xff]  ;;  %v216_v47 = vld [vmem:[#allocation3 + $0x38] sm:$0xff]  ;;  %v274_v48 = vld [vmem:[#allocation6 + $0x230] sm:$0xff] }
  0x32   :  { %436 = vmatpush.msrb.mxu3 %v431_v5  ;;  %335 = vmatpush.msrb.mxu1 %v332_v11  ;;  %v324_v49 = vld [vmem:[#allocation6 + $0x2b0] sm:$0xff]  ;;  %v371_v50 = vld [vmem:[#allocation6 + $0x318] sm:$0xff]  ;;  %v273_v52 = vld [vmem:[#allocation6 + $0x228] sm:$0xff] }
  0x33   :  { %387 = vmatpush.msrb.mxu2 %v380_v8  ;;  %286 = vmatpush.msrb.mxu0 %v281_v14  ;;  %v421_v51 = vld [vmem:[#allocation6 + $0x398] sm:$0xff]  ;;  %v323_v53 = vld [vmem:[#allocation6 + $0x2a8] sm:$0xff]  ;;  %v370_v54 = vld [vmem:[#allocation6 + $0x310] sm:$0xff] }
  0x34   :  { %437 = vmatpush.msrb.mxu3 %v430_v9  ;;  %336 = vmatpush.msrb.mxu1 %v331_v15  ;;  %v420_v55 = vld [vmem:[#allocation6 + $0x390] sm:$0xff]  ;;  %v272_v56 = vld [vmem:[#allocation6 + $0x220] sm:$0xff]  ;;  %v369_v58 = vld [vmem:[#allocation6 + $0x308] sm:$0xff] }
  0x35   :  { %388 = vmatpush.msrb.mxu2 %v379_v12  ;;  %287 = vmatpush.msrb.mxu0 %v280_v18  ;;  %v322_v57 = vld [vmem:[#allocation6 + $0x2a0] sm:$0xff]  ;;  %v419_v59 = vld [vmem:[#allocation6 + $0x388] sm:$0xff]  ;;  %v116_v61 = vld [vmem:[#allocation3 + $0x18] sm:$0xff] }
  0x36   :  { %438 = vmatpush.msrb.mxu3 %v429_v13  ;;  %337 = vmatpush.msrb.mxu1 %v330_v19  ;;  %v67_v60 = vld [vmem:[#allocation3 + $0x8] sm:$0xff]  ;;  %v271_v62 = vld [vmem:[#allocation6 + $0x218] sm:$0xff]  ;;  %v368_v0 = vld [vmem:[#allocation6 + $0x300] sm:$0xff] }
  0x37   :  { %389 = vmatpush.msrb.mxu2 %v378_v16  ;;  %288 = vmatpush.msrb.mxu0 %v279_v22  ;;  %v321_v63 = vld [vmem:[#allocation6 + $0x298] sm:$0xff]  ;;  %v418_v1 = vld [vmem:[#allocation6 + $0x380] sm:$0xff]  ;;  %v415_v3 = vld [vmem:[#allocation3 + $0x70] sm:$0xff] }
  0x38   :  { %439 = vmatpush.msrb.mxu3 %v428_v17  ;;  %338 = vmatpush.msrb.mxu1 %v329_v23  ;;  %v365_v2 = vld [vmem:[#allocation3 + $0x60] sm:$0xff]  ;;  %v270_v4 = vld [vmem:[#allocation6 + $0x210] sm:$0xff]  ;;  %v269_v6 = vld [vmem:[#allocation6 + $0x208] sm:$0xff] }
  0x39   :  { %390 = vmatpush.msrb.mxu2 %v377_v20  ;;  %250 = vmatmul.f32.vlgmr.msra.gmra.mxu3 %v215_v27  ;;  %v320_v5 = vld [vmem:[#allocation6 + $0x290] sm:$0xff]  ;;  %v319_v7 = vld [vmem:[#allocation6 + $0x288] sm:$0xff]  ;;  %v268_v8 = vld [vmem:[#allocation6 + $0x200] sm:$0xff] }
  0x3a   :  { %440 = vmatpush.msrb.mxu3 %v427_v21  ;;  %200 = vmatmul.f32.vlgmr.msra.gmra.mxu2 %v165_v26  ;;  %v318_v9 = vld [vmem:[#allocation6 + $0x280] sm:$0xff]  ;;  %v315_v11 = vld [vmem:[#allocation3 + $0x50] sm:$0xff]  ;;  %v366_v12 = vld [vmem:[#allocation3 + $0x68] sm:$0xff] }
  0x3b   :  { %391 = vmatpush.msrb.mxu2 %v376_v24  ;;  %289 = vmatpush.msrb.mxu0 %v278_v28  ;;  %v265_v10 = vld [vmem:[#allocation3 + $0x40] sm:$0xff]  ;;  %v416_v13 = vld [vmem:[#allocation3 + $0x78] sm:$0xff]  ;;  %v266_v14 = vld [vmem:[#allocation3 + $0x48] sm:$0xff] }
  0x3c   :  { %441 = vmatpush.msrb.mxu3 %v426_v25  ;;  %339 = vmatpush.msrb.mxu1 %v328_v29  ;;  %v316_v15 = vld [vmem:[#allocation3 + $0x58] sm:$0xff] }
  0x3d   :  { %392 = vmatpush.msrb.mxu2 %v375_v30  ;;  %290 = vmatpush.msrb.mxu0 %v277_v32 }
  0x3e   :  { %442 = vmatpush.msrb.mxu3 %v425_v31  ;;  %340 = vmatpush.msrb.mxu1 %v327_v33 }
  0x3f   :  { %393 = vmatpush.msrb.mxu2 %v374_v34  ;;  %291 = vmatpush.msrb.mxu0 %v276_v36 }
  0x40   :  { %443 = vmatpush.msrb.mxu3 %v424_v35  ;;  %341 = vmatpush.msrb.mxu1 %v326_v37 }
  0x41   :  { %394 = vmatpush.msrb.mxu2 %v373_v38  ;;  %100 = vmatmul.f32.vlgmr.msra.gmra.mxu0 %v66_v40 }
  0x42   :  { %444 = vmatpush.msrb.mxu3 %v423_v39  ;;  %150 = vmatmul.f32.vlgmr.msra.gmra.mxu1 %v115_v41 }
  0x43   :  { %292 = vmatpush.msrb.mxu0 %v275_v42  ;;  %342 = vmatpush.msrb.mxu1 %v325_v43 }
  0x44   :  { %395 = vmatpush.msrb.mxu2 %v372_v44  ;;  %445 = vmatpush.msrb.mxu3 %v422_v45 }
  0x45   :  { %203 = vmatmul.f32.gmra.mxu2 %v166_v46  ;;  %253 = vmatmul.f32.gmra.mxu3 %v216_v47 }
  0x46   :  { %293 = vmatpush.msrb.mxu0 %v274_v48  ;;  %343 = vmatpush.msrb.mxu1 %v324_v49 }
  0x47   :  { %396 = vmatpush.msrb.mxu2 %v371_v50  ;;  %446 = vmatpush.msrb.mxu3 %v421_v51 }
  0x48   :  { %294 = vmatpush.msrb.mxu0 %v273_v52  ;;  %344 = vmatpush.msrb.mxu1 %v323_v53 }
  0x49   :  { %397 = vmatpush.msrb.mxu2 %v370_v54  ;;  %447 = vmatpush.msrb.mxu3 %v420_v55 }
  0x4a   :  { %295 = vmatpush.msrb.mxu0 %v272_v56  ;;  %345 = vmatpush.msrb.mxu1 %v322_v57 }
  0x4b   :  { %398 = vmatpush.msrb.mxu2 %v369_v58  ;;  %448 = vmatpush.msrb.mxu3 %v419_v59 }
  0x4c   :  { %103 = vmatmul.f32.gmra.mxu0 %v67_v60  ;;  %153 = vmatmul.f32.gmra.mxu1 %v116_v61 }
  0x4d   :  { %296 = vmatpush.msrb.mxu0 %v271_v62  ;;  %346 = vmatpush.msrb.mxu1 %v321_v63 }
  0x4e   :  { %399 = vmatpush.msrb.mxu2 %v368_v0  ;;  %449 = vmatpush.msrb.mxu3 %v418_v1 }
  0x4f   :  { %400 = vmatmul.f32.vlgmr.msrb.gmra.mxu2 %v365_v2  ;;  %450 = vmatmul.f32.vlgmr.msrb.gmra.mxu3 %v415_v3 }
  0x50   :  { %297 = vmatpush.msrb.mxu0 %v270_v4  ;;  %347 = vmatpush.msrb.mxu1 %v320_v5 }
  0x52   :  { %298 = vmatpush.msrb.mxu0 %v269_v6  ;;  %348 = vmatpush.msrb.mxu1 %v319_v7 }
  0x54   :  { %299 = vmatpush.msrb.mxu0 %v268_v8  ;;  %349 = vmatpush.msrb.mxu1 %v318_v9 }
  0x55   :  { %300 = vmatmul.f32.vlgmr.msrb.gmra.mxu0 %v265_v10  ;;  %350 = vmatmul.f32.vlgmr.msrb.gmra.mxu1 %v315_v11 }
  0x57   :  { %403 = vmatmul.f32.gmra.mxu2 %v366_v12  ;;  %453 = vmatmul.f32.gmra.mxu3 %v416_v13 }
  0x5d   :  { %303 = vmatmul.f32.gmra.mxu0 %v266_v14  ;;  %353 = vmatmul.f32.gmra.mxu1 %v316_v15 }
  0xbc   :  { %v251_v17 = vpop.f32.mrf.mxu3 }
  0xbd   :  { %v201_v16 = vpop.f32.mrf.mxu2  ;;  %486 = vst [vmem:[#allocation8 + $0x30] sm:$0xff] %v251_v17 }
  0xbe   :  { %v101_v18 = vpop.f32.mrf.mxu0  ;;  %484 = vst [vmem:[#allocation8 + $0x20] sm:$0xff] %v201_v16 }
  0xbf   :  { %v151_v19 = vpop.f32.mrf.mxu1  ;;  %480 = vst [vmem:[#allocation8] sm:$0xff] %v101_v18 }
  0xc0   :  { %482 = vst [vmem:[#allocation8 + $0x10] sm:$0xff] %v151_v19 }
  0xc8   :  { %v204_v20 = vpop.f32.mrf.mxu2  ;;  %v254_v21 = vpop.f32.mrf.mxu3 }
  0xc9   :  { %v104_v22 = vpop.f32.mrf.mxu0  ;;  %v154_v23 = vpop.f32.mrf.mxu1  ;;  %485 = vst [vmem:[#allocation8 + $0x28] sm:$0xff] %v204_v20 }
  0xca   :  { %481 = vst [vmem:[#allocation8 + $0x8] sm:$0xff] %v104_v22 }
  0xcb   :  { %483 = vst [vmem:[#allocation8 + $0x18] sm:$0xff] %v154_v23 }
  0xcc   :  { %487 = vst [vmem:[#allocation8 + $0x38] sm:$0xff] %v254_v21 }
  0xd2   :  { %v301_v24 = vpop.f32.mrf.mxu0  ;;  %v351_v25 = vpop.f32.mrf.mxu1 }
  0xd3   :  { %488 = vst [vmem:[#allocation8 + $0x40] sm:$0xff] %v301_v24  ;;  %v401_v26 = vpop.f32.mrf.mxu2  ;;  %v451_v27 = vpop.f32.mrf.mxu3 }
  0xd4   :  { %490 = vst [vmem:[#allocation8 + $0x50] sm:$0xff] %v351_v25 }
  0xd5   :  { %492 = vst [vmem:[#allocation8 + $0x60] sm:$0xff] %v401_v26 }
  0xd6   :  { %494 = vst [vmem:[#allocation8 + $0x70] sm:$0xff] %v451_v27 }
  0xda   :  { %v304_v28 = vpop.f32.mrf.mxu0  ;;  %v354_v29 = vpop.f32.mrf.mxu1 }
  0xdb   :  { %489 = vst [vmem:[#allocation8 + $0x48] sm:$0xff] %v304_v28  ;;  %v404_v30 = vpop.f32.mrf.mxu2  ;;  %v454_v31 = vpop.f32.mrf.mxu3 }
  0xdc   :  { %491 = vst [vmem:[#allocation8 + $0x58] sm:$0xff] %v354_v29 }
  0xdd   :  { %493 = vst [vmem:[#allocation8 + $0x68] sm:$0xff] %v404_v30 }
  0xde   :  { %495 = vst [vmem:[#allocation8 + $0x78] sm:$0xff] %v454_v31 }
  0xdf   :  { %508 = dma.vmem_to_hbm [thread:$0]  %s501_s1, 2048, %s503_s23, [#allocation5], %s600_s17, %s600_s17, %s601_s18  }
  0xe0   :  { %597 = dma.done.wait [#allocation5], 2048  }
  0xe1   :  { %598 = vsyncadd [#allocation5], 4294965248 }
  0xe2   :  { %513 = vsyncpa [#allocation4], 1 }
  0xe3   :  { %514 = vsyncpa [#allocation7], 1 }
  0xe4   :  { %515 = vsyncpa [#allocation5], 1 }

</bundles_post_ra>
